<compile_context>
chip_gen: v5e
topology: v5e:2x2
jax: 0.10.0
libtpu: 0.0.40
codegen_flags: <defaults>
</compile_context>

<pallas_src>
import numpy as np
import jax
import jax.numpy as jnp
from jax.experimental import pallas as pl
from jax.experimental.pallas import tpu as pltpu


def fourier_fbp_filter(size, n_angles, filter_type="ramp"):
    """Standard FBP ramp filter in the Fourier domain (real-valued, length `size`)."""
    if filter_type != "ramp":
        # TODO(synk): only the 'ramp' variant of fourier_fbp_filter is implemented.
        raise NotImplementedError(filter_type)
    n = np.concatenate((np.arange(1, size // 2 + 1, 2),
                        np.arange(size // 2 - 1, 0, -2)))
    f = np.zeros(size, dtype=np.float64)
    f[0] = 0.25
    f[1::2] = -1.0 / (np.pi * n) ** 2
    return 2.0 * np.real(np.fft.fft(f))  # (H_in,)


def build_operator(H_in, W_in, D_out, filter_type="ramp"):
    """Fuse ramp filter + bilinear back-projection + pi/(2W) scale into one matrix.

    Returns B of shape (H_in*W_in, D_out*D_out) in bfloat16 so that
        out = sinogram.reshape(N, H_in*W_in) @ B        (NCHW row-major flatten)
    plus (th, h) for reference checking.
    """
    theta = np.linspace(0.0, 180.0, W_in, endpoint=False)
    th = np.pi / 180.0 * theta
    h = fourier_fbp_filter(H_in, W_in, filter_type)  # the hG Parameter (real)

    # Circulant matrix realizing filt[:, w] = Re(ifft(h * fft(sino[:, w]))).
    K = np.real(np.fft.ifft(h[:, None] * np.fft.fft(np.eye(H_in), axis=0), axis=0))  # (H, H)

    # Back-projection weights.  grid_sample: mode='bilinear', padding_mode='zeros',
    # align_corners=True (legacy-PyTorch semantics this module assumes).
    DD = D_out * D_out
    X, Y = np.mgrid[0:D_out, 0:D_out]
    xpr = X - D_out // 2
    ypr = Y - D_out // 2
    St = np.zeros((W_in, H_in, DD), dtype=np.float64)
    p_idx = np.arange(DD)
    for i in range(W_in):
        t = ypr * np.cos(th[i]) - xpr * np.sin(th[i])
        ty = t / (H_in // 2)
        y_pix = (ty + 1.0) * (H_in - 1) / 2.0  # align_corners=True unnormalization
        y0 = np.floor(y_pix).astype(np.int64)
        y1 = y0 + 1
        wy = (y_pix - y0).ravel()
        y0 = y0.ravel()
        y1 = y1.ravel()
        v0 = (y0 >= 0) & (y0 < H_in)
        v1 = (y1 >= 0) & (y1 < H_in)
        St[i, y0[v0], p_idx[v0]] += (1.0 - wy)[v0]
        St[i, y1[v1], p_idx[v1]] += wy[v1]

    # B[k, w, p] = scale * sum_h K[h, k] * St[w, h, p]  (fold filter + scale into BP op)
    scale = np.pi / (2.0 * W_in)
    B = np.einsum('hk,whp->kwp', K, St) * scale          # (H_in, W_in, DD)
    B_flat = np.ascontiguousarray(B.reshape(H_in * W_in, DD)).astype(np.float32)
    return jnp.asarray(B_flat).astype(jnp.bfloat16), th, h


def _fbp_kernel(x_ref, b_ref, o_ref):
    # x_ref: (Nblk, H*W) bf16   b_ref: (H*W, DDt) bf16   o_ref: (Nblk, DDt) f32
    o_ref[...] = jnp.dot(x_ref[...], b_ref[...], preferred_element_type=jnp.float32)


def _round_up(x, m):
    return (x + m - 1) // m * m


def inv_radon_fourier(x, B, D_out, *, n_block=None, dd_block=8192):
    """x: (N, 1, H_in, W_in) float32 -> (N, 1, D_out, D_out) float32."""
    N, C, H_in, W_in = x.shape
    assert C == 1
    HW = H_in * W_in
    DD = D_out * D_out
    assert B.shape == (HW, DD)

    # Batch goes into the MXU M dimension; output pixels tiled along lanes.
    if n_block is None:
        n_block = min(_round_up(N, 8), 256)
    if DD <= dd_block or DD % 128 != 0:
        dd_blk = DD                      # full-extent lane block
    else:
        dd_blk = dd_block                # 128-aligned lane tiles of the operator/output

    # NCHW row-major flatten: index = h * W_in + w (matches the operator layout).
    x_flat = x.reshape(N, HW).astype(jnp.bfloat16)
    n_pad = _round_up(N, n_block)
    if n_pad != N:
        x_flat = jnp.pad(x_flat, ((0, n_pad - N), (0, 0)))

    grid = (pl.cdiv(n_pad, n_block), pl.cdiv(DD, dd_blk))
    vmem_bytes = 2 * (n_block * HW * 2 + HW * dd_blk * 2 + n_block * dd_blk * 4) + (2 << 20)
    cost = pl.CostEstimate(
        flops=2 * n_pad * HW * DD,
        transcendentals=0,
        bytes_accessed=n_pad * HW * 2 + HW * DD * 2 + n_pad * DD * 4,
    )

    out = pl.pallas_call(
        _fbp_kernel,
        out_shape=jax.ShapeDtypeStruct((n_pad, DD), jnp.float32),
        grid=grid,
        in_specs=[
            pl.BlockSpec((n_block, HW), lambda n, d: (n, 0)),
            pl.BlockSpec((HW, dd_blk), lambda n, d: (0, d)),
        ],
        out_specs=pl.BlockSpec((n_block, dd_blk), lambda n, d: (n, d)),
        compiler_params=pltpu.CompilerParams(
            dimension_semantics=("parallel", "parallel"),
            vmem_limit_bytes=int(min(max(vmem_bytes, 16 << 20), 48 << 20)),
        ),
        cost_estimate=cost,
    )(x_flat, B)
    # TODO(synk): for very large H_in*W_in add a reduction grid axis over HW with a
    # pltpu.VMEM f32 accumulator (pl.when init/writeback) so operator tiles stay bounded.
    return out[:N].reshape(N, 1, D_out, D_out)


if __name__ == "__main__":
    H_in, W_in, D_out = 16, 8, 16
    N = 2
    key = jax.random.PRNGKey(0)
    x = jax.random.normal(key, (N, 1, H_in, W_in), dtype=jnp.float32)

    B, th, h = build_operator(H_in, W_in, D_out)
    out = inv_radon_fourier(x, B, D_out)
    out = jax.block_until_ready(out)

    # NumPy reference of the exact module forward:
    # fft2 * hG (along H) -> ifft2 (real) -> grid_sample back-projection -> * pi/(2W).
    xn = np.asarray(x, dtype=np.float64)
    xf = np.fft.fft2(xn[:, 0])
    xf *= h[None, :, None]
    filtered = np.real(np.fft.ifft2(xf))  # (N, H, W)
    X, Y = np.mgrid[0:D_out, 0:D_out]
    xpr = X - D_out // 2
    ypr = Y - D_out // 2
    ref = np.zeros((N, 1, D_out, D_out))
    for i in range(W_in):
        t = ypr * np.cos(th[i]) - xpr * np.sin(th[i])
        y_pix = (t / (H_in // 2) + 1.0) * (H_in - 1) / 2.0
        y0 = np.floor(y_pix).astype(np.int64)
        y1 = y0 + 1
        wy = y_pix - y0
        v0 = np.where((y0 >= 0) & (y0 < H_in),
                      filtered[:, np.clip(y0, 0, H_in - 1), i], 0.0)
        v1 = np.where((y1 >= 0) & (y1 < H_in),
                      filtered[:, np.clip(y1, 0, H_in - 1), i], 0.0)
        ref[:, 0] += (1.0 - wy) * v0 + wy * v1
    ref *= np.pi / (2.0 * W_in)

    np.testing.assert_allclose(np.asarray(out), ref, rtol=5e-2, atol=5e-2)
    print("KERNEL_OK")
</pallas_src>

<mosaic_0001>
module attributes {stable_mosaic.version = 11 : i64} {
  func.func @_fbp_kernel(%arg0: i32, %arg1: i32, %arg2: memref<8x128xbf16, #tpu.memory_space<vmem>>, %arg3: memref<128x256xbf16, #tpu.memory_space<vmem>>, %arg4: memref<8x256xf32, #tpu.memory_space<vmem>>) attributes {dimension_semantics = [#tpu.dimension_semantics<parallel>, #tpu.dimension_semantics<parallel>], iteration_bounds = array<i64: 1, 1>, scalar_prefetch = 0 : i64, scratch_operands = 0 : i64, tpu.core_type = #tpu.core_type<tc>, window_params = [{transform_indices = @transform_0, window_bounds = array<i64: 8, 128>}, {transform_indices = @transform_1, window_bounds = array<i64: 128, 256>}, {transform_indices = @transform_2, window_bounds = array<i64: 8, 256>}]} {
    %c0 = arith.constant 0 : index
    %c0_0 = arith.constant 0 : index
    %0 = vector.load %arg2[%c0, %c0_0] : memref<8x128xbf16, #tpu.memory_space<vmem>>, vector<8x128xbf16>
    %c0_1 = arith.constant 0 : index
    %c0_2 = arith.constant 0 : index
    %1 = vector.load %arg3[%c0_1, %c0_2] : memref<128x256xbf16, #tpu.memory_space<vmem>>, vector<128x256xbf16>
    %cst = arith.constant dense<0.000000e+00> : vector<8x256xf32>
    %2 = tpu.matmul %0, %1, %cst {dimension_numbers = #tpu.dot_dimension_numbers<[1], [0], [0], [1], [0, 0, 1, 1], [], []>} : vector<8x128xbf16>, vector<128x256xbf16>, vector<8x256xf32> -> vector<8x256xf32>
    %c0_3 = arith.constant 0 : index
    %c0_4 = arith.constant 0 : index
    %3 = vector.load %arg4[%c0_3, %c0_4] : memref<8x256xf32, #tpu.memory_space<vmem>>, vector<8x256xf32>
    tpu.vector_store %arg4[%c0_3, %c0_4], %2 {strides = array<i32>} : memref<8x256xf32, #tpu.memory_space<vmem>>, vector<8x256xf32>,
    return
  }
  func.func @transform_0(%arg0: i32, %arg1: i32) -> (i32, i32) {
    %c0_i32 = arith.constant 0 : i32
    %c0_i32_0 = arith.constant 0 : i32
    return %arg0, %c0_i32 : i32, i32
  }
  func.func @transform_1(%arg0: i32, %arg1: i32) -> (i32, i32) {
    %c0_i32 = arith.constant 0 : i32
    %c0_i32_0 = arith.constant 0 : i32
    return %c0_i32, %arg1 : i32, i32
  }
  func.func @transform_2(%arg0: i32, %arg1: i32) -> (i32, i32) {
    %c0_i32 = arith.constant 0 : i32
    return %arg0, %arg1 : i32, i32
  }
}

</mosaic_0001>

<bundles_post_ra>
// kernel: tpu_custom_call.1
= control target key start
LH: loop header
LB: loop body
LE: loop exit
PB: predicated region body
PF: predicated region fallthrough
CT: control target
= control target key end

     0   :  { %7 = vsyncpa [#allocation3], 0  ;;  %s377_s0 = inlined_call_operand.hbm [shape: bf16[8,128], index: 0, kind: input, shape index: {}]   ;;  %s378_s1 = inlined_call_operand.hbm [shape: bf16[128,256], index: 1, kind: input, shape index: {}]   ;;  %s379_s2 = inlined_call_operand.hbm [shape: f32[8,256], index: 2, kind: output, shape index: {}]  }
   0x1   :  { %8 = vsyncpa [#allocation6], 0 }
   0x2   :  { %9 = vsyncpa [#allocation4], 0  ;;  %s15_s11 = sshll.u32 %s377_s0, 4  ;;  %s348_s12 = smov [#allocation2]   ;;  %s16_s11 = int_to_ptr.hbm [resolvable:$true] %s15_s11 }
   0x3   :  { %s17_s13 = sshll.u32 %s348_s12, 4  ;;  %s25_s16 = sshll.u32 %s378_s1, 4  ;;  %s18_s13 = int_to_ptr.vmem [resolvable:$true] %s17_s13  ;;  %s26_s16 = int_to_ptr.hbm [resolvable:$true] %s25_s16 }
   0x4   :  { %20 = dma.hbm_to_vmem [thread:$0]  %s16_s11, 64, %s18_s13, [#allocation3]  }
   0x5   :  { %s349_s17 = smov [#allocation5]   ;;  %s350_s19 = smov 128  }
   0x6   :  { %s27_s18 = sshll.u32 %s349_s17, 4  ;;  %s351_s20 = smov 8   ;;  %s28_s18 = int_to_ptr.vmem [resolvable:$true] %s27_s18 }
   0x7   :  { %33 = dma.hbm_to_vmem [thread:$0]  %s26_s16, 2048, %s28_s18, [#allocation6], %s350_s19, %s350_s19, %s351_s20  }
   0x8   :  { %342 = dma.done.wait [#allocation3], 64  }
   0x9   :  { %343 = vsyncadd [#allocation3], 4294967232 }
   0xa   :  { %344 = dma.done.wait [#allocation6], 2048  }
   0xb   :  { %345 = vsyncadd [#allocation6], 4294965248  ;;  %v243_v0 = vld [vmem:[#allocation5 + $0x70] sm:$0xf]  ;;  %v264_v1 = vld [vmem:[#allocation5 + $0x74] sm:$0xf0] }
   0xc   :  { %v263_v2 = vld [vmem:[#allocation5 + $0x74] sm:$0xf]  ;;  %v244_v3 = vor.u32 %v264_v1, %v243_v0  ;;  %v245_v4 = vld [vmem:[#allocation5 + $0x78] sm:$0xf0]  ;;  %v235_v5 = vld [vmem:[#allocation5 + $0x60] sm:$0xf] }
   0xd   :  { %v262_v6 = vld [vmem:[#allocation5 + $0x64] sm:$0xf0]  ;;  %v248_v7 = vor.u32 %v263_v2, %v245_v4  ;;  %v261_v8 = vld [vmem:[#allocation5 + $0x64] sm:$0xf]  ;;  %v237_v9 = vld [vmem:[#allocation5 + $0x68] sm:$0xf0] }
   0xe   :  { %139 = vmatpush.bf16.msra.mxu0 %v244_v3  ;;  %v236_v10 = vor.u32 %v262_v6, %v235_v5  ;;  %v240_v11 = vor.u32 %v261_v8, %v237_v9  ;;  %v227_v12 = vld [vmem:[#allocation5 + $0x50] sm:$0xf]  ;;  %v260_v13 = vld [vmem:[#allocation5 + $0x54] sm:$0xf0]  ;;  %v259_v14 = vld [vmem:[#allocation5 + $0x54] sm:$0xf] }
   0xf   :  { %152 = vmatpush.bf16.msra.mxu1 %v248_v7  ;;  %v229_v15 = vld [vmem:[#allocation5 + $0x58] sm:$0xf0]  ;;  %v228_v16 = vor.u32 %v260_v13, %v227_v12  ;;  %v219_v18 = vld [vmem:[#allocation5 + $0x40] sm:$0xf]  ;;  %v258_v19 = vld [vmem:[#allocation5 + $0x44] sm:$0xf0] }
  0x10   :  { %v232_v17 = vor.u32 %v259_v14, %v229_v15  ;;  %v257_v20 = vld [vmem:[#allocation5 + $0x44] sm:$0xf]  ;;  %v221_v21 = vld [vmem:[#allocation5 + $0x48] sm:$0xf0]  ;;  %v220_v22 = vor.u32 %v258_v19, %v219_v18  ;;  %v211_v24 = vld [vmem:[#allocation5 + $0x30] sm:$0xf] }
  0x11   :  { %v224_v23 = vor.u32 %v257_v20, %v221_v21  ;;  %v256_v25 = vld [vmem:[#allocation5 + $0x34] sm:$0xf0]  ;;  %v255_v26 = vld [vmem:[#allocation5 + $0x34] sm:$0xf]  ;;  %v213_v27 = vld [vmem:[#allocation5 + $0x38] sm:$0xf0] }
  0x12   :  { %140 = vmatpush.bf16.msra.mxu0 %v236_v10  ;;  %v212_v28 = vor.u32 %v256_v25, %v211_v24  ;;  %v216_v29 = vor.u32 %v255_v26, %v213_v27  ;;  %v203_v30 = vld [vmem:[#allocation5 + $0x20] sm:$0xf]  ;;  %v254_v31 = vld [vmem:[#allocation5 + $0x24] sm:$0xf0]  ;;  %v253_v32 = vld [vmem:[#allocation5 + $0x24] sm:$0xf] }
  0x13   :  { %153 = vmatpush.bf16.msra.mxu1 %v240_v11  ;;  %v205_v33 = vld [vmem:[#allocation5 + $0x28] sm:$0xf0]  ;;  %v204_v34 = vor.u32 %v254_v31, %v203_v30  ;;  %v195_v36 = vld [vmem:[#allocation5 + $0x10] sm:$0xf]  ;;  %v252_v37 = vld [vmem:[#allocation5 + $0x14] sm:$0xf0] }
  0x14   :  { %v208_v35 = vor.u32 %v253_v32, %v205_v33  ;;  %v251_v38 = vld [vmem:[#allocation5 + $0x14] sm:$0xf]  ;;  %v197_v39 = vld [vmem:[#allocation5 + $0x18] sm:$0xf0]  ;;  %v196_v40 = vor.u32 %v252_v37, %v195_v36  ;;  %v187_v42 = vld [vmem:[#allocation5] sm:$0xf] }
  0x15   :  { %v200_v41 = vor.u32 %v251_v38, %v197_v39  ;;  %v250_v43 = vld [vmem:[#allocation5 + $0x4] sm:$0xf0]  ;;  %v249_v44 = vld [vmem:[#allocation5 + $0x4] sm:$0xf]  ;;  %v189_v45 = vld [vmem:[#allocation5 + $0x8] sm:$0xf0] }
  0x16   :  { %141 = vmatpush.bf16.msra.mxu0 %v228_v16  ;;  %v188_v46 = vor.u32 %v250_v43, %v187_v42  ;;  %v192_v47 = vor.u32 %v249_v44, %v189_v45  ;;  %v42_v48 = vld [vmem:[#allocation2] sm:$0xf]  ;;  %s352_s0 = smov [#allocation7]   ;;  %s174_s23 = sshll.u32 %s379_s2, 4  ;;  %s175_s23 = int_to_ptr.hbm [resolvable:$true] %s174_s23 }
  0x17   :  { %154 = vmatpush.bf16.msra.mxu1 %v232_v17  ;;  %s172_s1 = sshll.u32 %s352_s0, 4  ;;  %s173_s1 = int_to_ptr.vmem [resolvable:$true] %s172_s1 }
  0x1a   :  { %142 = vmatpush.bf16.msra.mxu0 %v220_v22 }
  0x1b   :  { %155 = vmatpush.bf16.msra.mxu1 %v224_v23 }
  0x1e   :  { %143 = vmatpush.bf16.msra.mxu0 %v212_v28 }
  0x1f   :  { %156 = vmatpush.bf16.msra.mxu1 %v216_v29 }
  0x22   :  { %144 = vmatpush.bf16.msra.mxu0 %v204_v34 }
  0x23   :  { %157 = vmatpush.bf16.msra.mxu1 %v208_v35 }
  0x26   :  { %145 = vmatpush.bf16.msra.mxu0 %v196_v40 }
  0x27   :  { %158 = vmatpush.bf16.msra.mxu1 %v200_v41 }
  0x2a   :  { %146 = vmatpush.bf16.msra.mxu0 %v188_v46 }
  0x2b   :  { %159 = vmatpush.bf16.msra.mxu1 %v192_v47 }
  0x2d   :  { %147 = vmatmul.bf16.vlgmr.msra.gmra.mxu0 %v42_v48 }
  0x2e   :  { %160 = vmatmul.bf16.vlgmr.msra.gmra.mxu1 %v42_v48 }
  0xaa   :  { %v148_v49 = vpop.f32.mrf.mxu0 }
  0xab   :  { %165 = vst [vmem:[#allocation7] sm:$0xff] %v148_v49  ;;  %v161_v50 = vpop.f32.mrf.mxu1 }
  0xac   :  { %166 = vst [vmem:[#allocation7 + $0x8] sm:$0xff] %v161_v50 }
  0xad   :  { %177 = dma.vmem_to_hbm [thread:$0]  %s173_s1, 256, %s175_s23, [#allocation4]  }
  0xb2   :  { %v150_v51 = vpop.f32.mrf.mxu0 }
  0xb3   :  { %v163_v52 = vpop.f32.mrf.mxu1 }
  0xb4   :  { %346 = dma.done.wait [#allocation4], 256  }
  0xb5   :  { %347 = vsyncadd [#allocation4], 4294967040 }
  0xb6   :  { %182 = vsyncpa [#allocation3], 1 }
  0xb7   :  { %183 = vsyncpa [#allocation6], 1 }
  0xb8   :  { %184 = vsyncpa [#allocation4], 1 }

</bundles_post_ra>
